<compile_context>
chip_gen: v6e
topology: v6e:2x2x1
jax: 0.10.0
libtpu: 0.0.40
codegen_flags: <defaults>
</compile_context>

<pallas_src>
import functools

import jax
import jax.numpy as jnp
from jax import lax
from jax.experimental import pallas as pl
from jax.experimental.pallas import tpu as pltpu


def _patch_dropout_gather_kernel(idx_ref, x_ref, o_ref, *, num_prefix, num_keep):
    """One (batch, D-tile) grid step.

    idx_ref: SMEM scalar-prefetch table, flat (B * num_keep,) int32, patch-relative.
    x_ref:   VMEM (N, d_blk)        -- full token slab for this batch / D tile.
    o_ref:   VMEM (P+num_keep, d_blk) -- gathered output slab for this batch / D tile.
    """
    b = pl.program_id(0)

    # Prefix (CLS) tokens: contiguous copy straight from the VMEM-resident slab.
    if num_prefix:
        o_ref[:num_prefix, :] = x_ref[:num_prefix, :]

    base = b * num_keep

    def body(j, carry):
        src = idx_ref[base + j] + num_prefix
        o_ref[pl.ds(num_prefix + j, 1), :] = x_ref[pl.ds(src, 1), :]
        return carry

    lax.fori_loop(0, num_keep, body, 0, unroll=(num_keep <= 16))


def _choose_d_block(N, n_out, D, itemsize, budget_bytes=24 << 20):
    """Largest D tile (multiple of 128 dividing D, or full D) whose double-buffered
    input + output slabs fit under `budget_bytes` of VMEM."""
    per_lane = (N + n_out) * itemsize * 2  # in + out, double-buffered, per D lane
    if D % 128 != 0 or per_lane * D <= budget_bytes:
        return D
    best = 128
    for cand in range(128, D + 1, 128):
        if D % cand == 0 and per_lane * cand <= budget_bytes:
            best = cand
    return best


def _gather_tokens_pallas(x, keep_indices, num_prefix, d_block=None):
    """Gather [prefix | selected patch tokens] per batch: (B,N,D) -> (B,P+num_keep,D)."""
    B, N, D = x.shape
    num_keep = keep_indices.shape[1]
    n_out = num_prefix + num_keep
    d_blk = d_block if d_block is not None else _choose_d_block(
        N, n_out, D, x.dtype.itemsize)
    assert D % d_blk == 0
    n_d = D // d_blk

    flat_idx = keep_indices.reshape(-1).astype(jnp.int32)

    kernel = functools.partial(
        _patch_dropout_gather_kernel, num_prefix=num_prefix, num_keep=num_keep)

    return pl.pallas_call(
        kernel,
        out_shape=jax.ShapeDtypeStruct((B, n_out, D), x.dtype),
        grid_spec=pltpu.PrefetchScalarGridSpec(
            num_scalar_prefetch=1,
            grid=(B, n_d),
            in_specs=[
                # Whole (N, d_blk) token slab per batch / D tile; last two block dims
                # are full extents (N) / multiples of 128 (d_blk) -> dense, unmasked.
                pl.BlockSpec((pl.Squeezed(), N, d_blk),
                             lambda b, dj, idx: (b, 0, dj)),
            ],
            out_specs=pl.BlockSpec((pl.Squeezed(), n_out, d_blk),
                                   lambda b, dj, idx: (b, 0, dj)),
        ),
        compiler_params=pltpu.CompilerParams(
            dimension_semantics=("parallel", "parallel"),
            vmem_limit_bytes=32 * 1024 * 1024,
        ),
    )(flat_idx, x)


def _reference_patch_dropout(x, keep_indices, num_prefix_tokens):
    """Pure-JAX reference mirroring torch.gather + cat (also the small-input path)."""
    prefix = x[:, :num_prefix_tokens]
    rest = x[:, num_prefix_tokens:]
    gathered = jnp.take_along_axis(rest, keep_indices[..., None], axis=1)
    if num_prefix_tokens:
        return jnp.concatenate([prefix, gathered], axis=1)
    return gathered


def patch_dropout(
    x: jax.Array,
    key: jax.Array,
    *,
    prob: float = 0.5,
    num_prefix_tokens: int = 1,
    ordered: bool = False,
    return_indices: bool = False,
    training: bool = True,
    use_pallas: bool | None = None,
):
    """JAX/Pallas equivalent of timm PatchDropout.forward.

    x: (B, N, D) with the first `num_prefix_tokens` rows being prefix (e.g. CLS) tokens.
    """
    assert 0 <= prob < 1.0
    if not training or prob == 0.0:
        if return_indices:
            return x, None
        return x

    B, N, D = x.shape
    P = num_prefix_tokens
    L = N - P
    num_keep = max(1, int(L * (1.0 - prob)))

    # torch.randn(B, L) -> argsort -> take first num_keep  (same semantics, JAX RNG)
    noise = jax.random.normal(key, (B, L), dtype=jnp.float32)
    keep_indices = jnp.argsort(noise, axis=-1)[:, :num_keep].astype(jnp.int32)
    if ordered:
        keep_indices = jnp.sort(keep_indices, axis=-1)

    if use_pallas is None:
        # Custom-call gather only pays off once it's HBM-bandwidth bound.
        use_pallas = B * N * D * x.dtype.itemsize >= (1 << 20)

    if use_pallas:
        out = _gather_tokens_pallas(x, keep_indices, P)
    else:
        out = _reference_patch_dropout(x, keep_indices, P)

    if return_indices:
        return out, keep_indices
    return out


if __name__ == "__main__":
    # Small ViT-ish shapes: batch=2, 1 prefix (CLS) token + 16 patch tokens, hidden=128.
    B, L, P, D = 2, 16, 1, 128
    N = P + L
    prob = 0.5

    key = jax.random.PRNGKey(0)
    kx, kdrop, kx2, kdrop2 = jax.random.split(key, 4)
    x = jax.random.normal(kx, (B, N, D), dtype=jnp.float32)

    fn = functools.partial(
        patch_dropout,
        prob=prob,
        num_prefix_tokens=P,
        ordered=False,
        return_indices=True,
        training=True,
        use_pallas=True,  # force the Pallas path even at these tiny demo shapes
    )
    out, keep_indices = fn(x, kdrop)
    out = jax.block_until_ready(out)
    keep_indices = jax.block_until_ready(keep_indices)

    num_keep = max(1, int(L * (1.0 - prob)))
    assert out.shape == (B, P + num_keep, D), out.shape
    assert keep_indices.shape == (B, num_keep), keep_indices.shape

    ref = _reference_patch_dropout(x, keep_indices, P)
    assert jnp.allclose(out, ref), "Pallas gather mismatch vs reference"

    # Second check: no prefix tokens, D=256 with a forced 128-wide D tile to exercise
    # the D-tiling grid axis, ordered indices.
    B2, L2, D2 = 2, 16, 256
    x2 = jax.random.normal(kx2, (B2, L2, D2), dtype=jnp.float32)
    noise2 = jax.random.normal(kdrop2, (B2, L2), dtype=jnp.float32)
    keep2 = jnp.sort(jnp.argsort(noise2, axis=-1)[:, :8].astype(jnp.int32), axis=-1)
    out2 = jax.block_until_ready(_gather_tokens_pallas(x2, keep2, 0, d_block=128))
    ref2 = _reference_patch_dropout(x2, keep2, 0)
    assert out2.shape == (B2, 8, D2), out2.shape
    assert jnp.allclose(out2, ref2), "Pallas gather mismatch vs reference (tiled D)"

    print("KERNEL_OK")
</pallas_src>

<mosaic_0001>
module attributes {stable_mosaic.version = 11 : i64} {
  func.func @_patch_dropout_gather_kernel(%arg0: i32, %arg1: i32, %arg2: memref<16xi32, #tpu.memory_space<smem>>, %arg3: memref<1x17x128xf32, #tpu.memory_space<vmem>>, %arg4: memref<1x9x128xf32, #tpu.memory_space<vmem>>) attributes {dimension_semantics = [#tpu.dimension_semantics<parallel>, #tpu.dimension_semantics<parallel>], iteration_bounds = array<i64: 2, 1>, scalar_prefetch = 1 : i64, scratch_operands = 0 : i64, tpu.core_type = #tpu.core_type<tc>, window_params = [{transform_indices = @transform_0, window_bounds = array<i64: 1, 17, 128>}, {transform_indices = @transform_1, window_bounds = array<i64: 1, 9, 128>}]} {
    %c0 = arith.constant 0 : index
    %c0_0 = arith.constant 0 : index
    %c0_1 = arith.constant 0 : index
    %0 = vector.load %arg3[%c0, %c0_0, %c0_1] : memref<1x17x128xf32, #tpu.memory_space<vmem>>, vector<1x1x128xf32>
    %1 = vector.shape_cast %0 : vector<1x1x128xf32> to vector<1x128xf32>
    %c0_2 = arith.constant 0 : index
    %c0_3 = arith.constant 0 : index
    %c0_4 = arith.constant 0 : index
    %2 = vector.load %arg4[%c0_2, %c0_3, %c0_4] : memref<1x9x128xf32, #tpu.memory_space<vmem>>, vector<1x1x128xf32>
    %3 = vector.shape_cast %2 : vector<1x1x128xf32> to vector<1x128xf32>
    %4 = vector.shape_cast %1 : vector<1x128xf32> to vector<1x1x128xf32>
    tpu.vector_store %arg4[%c0_2, %c0_3, %c0_4], %4 {strides = array<i32>} : memref<1x9x128xf32, #tpu.memory_space<vmem>>, vector<1x1x128xf32>,
    %c8_i32 = arith.constant 8 : i32
    %5 = arith.muli %arg0, %c8_i32 : i32
    %c0_i32 = arith.constant 0 : i32
    %6 = arith.addi %5, %c0_i32 : i32
    %7 = arith.index_cast %6 : i32 to index
    %8 = memref.load %arg2[%7] : memref<16xi32, #tpu.memory_space<smem>>
    %c1_i32 = arith.constant 1 : i32
    %9 = arith.addi %8, %c1_i32 : i32
    %c0_5 = arith.constant 0 : index
    %10 = arith.index_cast %9 : i32 to index
    %c0_6 = arith.constant 0 : index
    %11 = vector.load %arg3[%c0_5, %10, %c0_6] : memref<1x17x128xf32, #tpu.memory_space<vmem>>, vector<1x1x128xf32>
    %12 = vector.shape_cast %11 : vector<1x1x128xf32> to vector<1x128xf32>
    %c1_i32_7 = arith.constant 1 : i32
    %13 = arith.addi %c1_i32_7, %c0_i32 : i32
    %c0_8 = arith.constant 0 : index
    %14 = arith.index_cast %13 : i32 to index
    %c0_9 = arith.constant 0 : index
    %15 = vector.load %arg4[%c0_8, %14, %c0_9] : memref<1x9x128xf32, #tpu.memory_space<vmem>>, vector<1x1x128xf32>
    %16 = vector.shape_cast %15 : vector<1x1x128xf32> to vector<1x128xf32>
    %17 = vector.shape_cast %12 : vector<1x128xf32> to vector<1x1x128xf32>
    tpu.vector_store %arg4[%c0_8, %14, %c0_9], %17 {strides = array<i32>} : memref<1x9x128xf32, #tpu.memory_space<vmem>>, vector<1x1x128xf32>,
    %c1_i32_10 = arith.constant 1 : i32
    %18 = arith.addi %5, %c1_i32_10 : i32
    %19 = arith.index_cast %18 : i32 to index
    %20 = memref.load %arg2[%19] : memref<16xi32, #tpu.memory_space<smem>>
    %c1_i32_11 = arith.constant 1 : i32
    %21 = arith.addi %20, %c1_i32_11 : i32
    %c0_12 = arith.constant 0 : index
    %22 = arith.index_cast %21 : i32 to index
    %c0_13 = arith.constant 0 : index
    %23 = vector.load %arg3[%c0_12, %22, %c0_13] : memref<1x17x128xf32, #tpu.memory_space<vmem>>, vector<1x1x128xf32>
    %24 = vector.shape_cast %23 : vector<1x1x128xf32> to vector<1x128xf32>
    %c1_i32_14 = arith.constant 1 : i32
    %25 = arith.addi %c1_i32_14, %c1_i32_10 : i32
    %c0_15 = arith.constant 0 : index
    %26 = arith.index_cast %25 : i32 to index
    %c0_16 = arith.constant 0 : index
    %27 = vector.load %arg4[%c0_15, %26, %c0_16] : memref<1x9x128xf32, #tpu.memory_space<vmem>>, vector<1x1x128xf32>
    %28 = vector.shape_cast %27 : vector<1x1x128xf32> to vector<1x128xf32>
    %29 = vector.shape_cast %24 : vector<1x128xf32> to vector<1x1x128xf32>
    tpu.vector_store %arg4[%c0_15, %26, %c0_16], %29 {strides = array<i32>} : memref<1x9x128xf32, #tpu.memory_space<vmem>>, vector<1x1x128xf32>,
    %c2_i32 = arith.constant 2 : i32
    %30 = arith.addi %5, %c2_i32 : i32
    %31 = arith.index_cast %30 : i32 to index
    %32 = memref.load %arg2[%31] : memref<16xi32, #tpu.memory_space<smem>>
    %c1_i32_17 = arith.constant 1 : i32
    %33 = arith.addi %32, %c1_i32_17 : i32
    %c0_18 = arith.constant 0 : index
    %34 = arith.index_cast %33 : i32 to index
    %c0_19 = arith.constant 0 : index
    %35 = vector.load %arg3[%c0_18, %34, %c0_19] : memref<1x17x128xf32, #tpu.memory_space<vmem>>, vector<1x1x128xf32>
    %36 = vector.shape_cast %35 : vector<1x1x128xf32> to vector<1x128xf32>
    %c1_i32_20 = arith.constant 1 : i32
    %37 = arith.addi %c1_i32_20, %c2_i32 : i32
    %c0_21 = arith.constant 0 : index
    %38 = arith.index_cast %37 : i32 to index
    %c0_22 = arith.constant 0 : index
    %39 = vector.load %arg4[%c0_21, %38, %c0_22] : memref<1x9x128xf32, #tpu.memory_space<vmem>>, vector<1x1x128xf32>
    %40 = vector.shape_cast %39 : vector<1x1x128xf32> to vector<1x128xf32>
    %41 = vector.shape_cast %36 : vector<1x128xf32> to vector<1x1x128xf32>
    tpu.vector_store %arg4[%c0_21, %38, %c0_22], %41 {strides = array<i32>} : memref<1x9x128xf32, #tpu.memory_space<vmem>>, vector<1x1x128xf32>,
    %c3_i32 = arith.constant 3 : i32
    %42 = arith.addi %5, %c3_i32 : i32
    %43 = arith.index_cast %42 : i32 to index
    %44 = memref.load %arg2[%43] : memref<16xi32, #tpu.memory_space<smem>>
    %c1_i32_23 = arith.constant 1 : i32
    %45 = arith.addi %44, %c1_i32_23 : i32
    %c0_24 = arith.constant 0 : index
    %46 = arith.index_cast %45 : i32 to index
    %c0_25 = arith.constant 0 : index
    %47 = vector.load %arg3[%c0_24, %46, %c0_25] : memref<1x17x128xf32, #tpu.memory_space<vmem>>, vector<1x1x128xf32>
    %48 = vector.shape_cast %47 : vector<1x1x128xf32> to vector<1x128xf32>
    %c1_i32_26 = arith.constant 1 : i32
    %49 = arith.addi %c1_i32_26, %c3_i32 : i32
    %c0_27 = arith.constant 0 : index
    %50 = arith.index_cast %49 : i32 to index
    %c0_28 = arith.constant 0 : index
    %51 = vector.load %arg4[%c0_27, %50, %c0_28] : memref<1x9x128xf32, #tpu.memory_space<vmem>>, vector<1x1x128xf32>
    %52 = vector.shape_cast %51 : vector<1x1x128xf32> to vector<1x128xf32>
    %53 = vector.shape_cast %48 : vector<1x128xf32> to vector<1x1x128xf32>
    tpu.vector_store %arg4[%c0_27, %50, %c0_28], %53 {strides = array<i32>} : memref<1x9x128xf32, #tpu.memory_space<vmem>>, vector<1x1x128xf32>,
    %c4_i32 = arith.constant 4 : i32
    %54 = arith.addi %5, %c4_i32 : i32
    %55 = arith.index_cast %54 : i32 to index
    %56 = memref.load %arg2[%55] : memref<16xi32, #tpu.memory_space<smem>>
    %c1_i32_29 = arith.constant 1 : i32
    %57 = arith.addi %56, %c1_i32_29 : i32
    %c0_30 = arith.constant 0 : index
    %58 = arith.index_cast %57 : i32 to index
    %c0_31 = arith.constant 0 : index
    %59 = vector.load %arg3[%c0_30, %58, %c0_31] : memref<1x17x128xf32, #tpu.memory_space<vmem>>, vector<1x1x128xf32>
    %60 = vector.shape_cast %59 : vector<1x1x128xf32> to vector<1x128xf32>
    %c1_i32_32 = arith.constant 1 : i32
    %61 = arith.addi %c1_i32_32, %c4_i32 : i32
    %c0_33 = arith.constant 0 : index
    %62 = arith.index_cast %61 : i32 to index
    %c0_34 = arith.constant 0 : index
    %63 = vector.load %arg4[%c0_33, %62, %c0_34] : memref<1x9x128xf32, #tpu.memory_space<vmem>>, vector<1x1x128xf32>
    %64 = vector.shape_cast %63 : vector<1x1x128xf32> to vector<1x128xf32>
    %65 = vector.shape_cast %60 : vector<1x128xf32> to vector<1x1x128xf32>
    tpu.vector_store %arg4[%c0_33, %62, %c0_34], %65 {strides = array<i32>} : memref<1x9x128xf32, #tpu.memory_space<vmem>>, vector<1x1x128xf32>,
    %c5_i32 = arith.constant 5 : i32
    %66 = arith.addi %5, %c5_i32 : i32
    %67 = arith.index_cast %66 : i32 to index
    %68 = memref.load %arg2[%67] : memref<16xi32, #tpu.memory_space<smem>>
    %c1_i32_35 = arith.constant 1 : i32
    %69 = arith.addi %68, %c1_i32_35 : i32
    %c0_36 = arith.constant 0 : index
    %70 = arith.index_cast %69 : i32 to index
    %c0_37 = arith.constant 0 : index
    %71 = vector.load %arg3[%c0_36, %70, %c0_37] : memref<1x17x128xf32, #tpu.memory_space<vmem>>, vector<1x1x128xf32>
    %72 = vector.shape_cast %71 : vector<1x1x128xf32> to vector<1x128xf32>
    %c1_i32_38 = arith.constant 1 : i32
    %73 = arith.addi %c1_i32_38, %c5_i32 : i32
    %c0_39 = arith.constant 0 : index
    %74 = arith.index_cast %73 : i32 to index
    %c0_40 = arith.constant 0 : index
    %75 = vector.load %arg4[%c0_39, %74, %c0_40] : memref<1x9x128xf32, #tpu.memory_space<vmem>>, vector<1x1x128xf32>
    %76 = vector.shape_cast %75 : vector<1x1x128xf32> to vector<1x128xf32>
    %77 = vector.shape_cast %72 : vector<1x128xf32> to vector<1x1x128xf32>
    tpu.vector_store %arg4[%c0_39, %74, %c0_40], %77 {strides = array<i32>} : memref<1x9x128xf32, #tpu.memory_space<vmem>>, vector<1x1x128xf32>,
    %c6_i32 = arith.constant 6 : i32
    %78 = arith.addi %5, %c6_i32 : i32
    %79 = arith.index_cast %78 : i32 to index
    %80 = memref.load %arg2[%79] : memref<16xi32, #tpu.memory_space<smem>>
    %c1_i32_41 = arith.constant 1 : i32
    %81 = arith.addi %80, %c1_i32_41 : i32
    %c0_42 = arith.constant 0 : index
    %82 = arith.index_cast %81 : i32 to index
    %c0_43 = arith.constant 0 : index
    %83 = vector.load %arg3[%c0_42, %82, %c0_43] : memref<1x17x128xf32, #tpu.memory_space<vmem>>, vector<1x1x128xf32>
    %84 = vector.shape_cast %83 : vector<1x1x128xf32> to vector<1x128xf32>
    %c1_i32_44 = arith.constant 1 : i32
    %85 = arith.addi %c1_i32_44, %c6_i32 : i32
    %c0_45 = arith.constant 0 : index
    %86 = arith.index_cast %85 : i32 to index
    %c0_46 = arith.constant 0 : index
    %87 = vector.load %arg4[%c0_45, %86, %c0_46] : memref<1x9x128xf32, #tpu.memory_space<vmem>>, vector<1x1x128xf32>
    %88 = vector.shape_cast %87 : vector<1x1x128xf32> to vector<1x128xf32>
    %89 = vector.shape_cast %84 : vector<1x128xf32> to vector<1x1x128xf32>
    tpu.vector_store %arg4[%c0_45, %86, %c0_46], %89 {strides = array<i32>} : memref<1x9x128xf32, #tpu.memory_space<vmem>>, vector<1x1x128xf32>,
    %c7_i32 = arith.constant 7 : i32
    %90 = arith.addi %5, %c7_i32 : i32
    %91 = arith.index_cast %90 : i32 to index
    %92 = memref.load %arg2[%91] : memref<16xi32, #tpu.memory_space<smem>>
    %c1_i32_47 = arith.constant 1 : i32
    %93 = arith.addi %92, %c1_i32_47 : i32
    %c0_48 = arith.constant 0 : index
    %94 = arith.index_cast %93 : i32 to index
    %c0_49 = arith.constant 0 : index
    %95 = vector.load %arg3[%c0_48, %94, %c0_49] : memref<1x17x128xf32, #tpu.memory_space<vmem>>, vector<1x1x128xf32>
    %96 = vector.shape_cast %95 : vector<1x1x128xf32> to vector<1x128xf32>
    %c1_i32_50 = arith.constant 1 : i32
    %97 = arith.addi %c1_i32_50, %c7_i32 : i32
    %c0_51 = arith.constant 0 : index
    %98 = arith.index_cast %97 : i32 to index
    %c0_52 = arith.constant 0 : index
    %99 = vector.load %arg4[%c0_51, %98, %c0_52] : memref<1x9x128xf32, #tpu.memory_space<vmem>>, vector<1x1x128xf32>
    %100 = vector.shape_cast %99 : vector<1x1x128xf32> to vector<1x128xf32>
    %101 = vector.shape_cast %96 : vector<1x128xf32> to vector<1x1x128xf32>
    tpu.vector_store %arg4[%c0_51, %98, %c0_52], %101 {strides = array<i32>} : memref<1x9x128xf32, #tpu.memory_space<vmem>>, vector<1x1x128xf32>,
    %c8_i32_53 = arith.constant 8 : i32
    return
  }
  func.func @transform_0(%arg0: i32, %arg1: i32, %arg2: memref<16xi32, #tpu.memory_space<smem>>) -> (i32, i32, i32) {
    %c0_i32 = arith.constant 0 : i32
    %c0_i32_0 = arith.constant 0 : i32
    return %arg0, %c0_i32, %arg1 : i32, i32, i32
  }
  func.func @transform_1(%arg0: i32, %arg1: i32, %arg2: memref<16xi32, #tpu.memory_space<smem>>) -> (i32, i32, i32) {
    %c0_i32 = arith.constant 0 : i32
    %c0_i32_0 = arith.constant 0 : i32
    return %arg0, %c0_i32, %arg1 : i32, i32, i32
  }
}

</mosaic_0001>

<bundles_post_ra>
// kernel: tpu_custom_call.1
= control target key start
LH: loop header
LB: loop body
LE: loop exit
PB: predicated region body
PF: predicated region fallthrough
CT: control target
= control target key end

     0   :  { %s472_s0 = inlined_call_operand.vmem [shape: s32[16], index: 0, kind: input, shape index: {}]   ;;  %s473_s1 = inlined_call_operand.vmem [shape: f32[2,17,128], index: 1, kind: input, shape index: {}]   ;;  %s474_s2 = inlined_call_operand.vmem [shape: f32[2,9,128], index: 2, kind: output, shape index: {}]  }
   0x1   :  { %s7_s11 = sshll.u32 %s472_s0, 4  ;;  %s8_s11 = int_to_ptr.vmem [resolvable:$true] %s7_s11 }
   0x2   :  { %s350_s12 = scalar_lea.vmem %s8_s11, 16  ;;  %p355_p1 = scmp.lt.s32.totalorder %s8_s11, %s8_s11 }
   0x3   :  { %p351_p0 = scmp.ne.s32.totalorder %s8_s11, %s350_s12  ;;  %p356_p2 = scmp.lt.s32.totalorder %s350_s12, %s350_s12 }
   0x5   :  { %p357_p3 = por %p356_p2, %p355_p1 }
   0x7   :  { %p358_p4 = pnand %p357_p3, %p351_p0 }
   0x9   :  { %361 = shalt.err (!%p358_p4)  }
   0xa   :  { %s388_s13 = smov [#allocation3]  }
   0xb   :  { %10 = dma.vmem_to_smem %s8_s11, 16, %s388_s13, [#allocation2] }
   0xc   :  { %374 = dma.done.wait [#allocation2], 16 }
   0xd   :  { %375 = vsyncadd [#allocation2], 4294967280 }
   0xe   :  { %12 = sfence }
   0xf   :  { %s407_s14 = smov 0   ;;  %s409_s15 = smov 0  }
  0x10   :  { %s411_s16 = smov 0  }
  0x11 LB: > { %s30_s0 = sadd.s32 1, %s382_s15  ;;  %p308_p5 = scmp.ge.s32.totalorder %s386_s16, 1  ;;  %s386_s16 = sphi %s411_s16, %s18_s16   ;;  %s382_s15 = sphi %s409_s15, %s476_s15   ;;  %s378_s14 = sphi %s407_s14, %s475_s14  }
  0x12   : > { %p32_p6 = scmp.ge.s32.totalorder %s30_s0, 2  ;;  %p113_p7 = scmp.lt.s32.totalorder %s386_s16, 3 }
  0x14   : > { %s478_s0 = smov (%p32_p6, %s30_s0), 0  ;;  %p114_p8 = pnand %p308_p5, %p113_p7 }
  0x15   : > { %p139_p9 = scmp.lt.s32.totalorder (!%p114_p8), %s378_s14, 1  ;;  %s425_s17 = sshll.u32 (!%p114_p8), %s378_s14, 3 }
  0x16   : > { %117 = sbr.rel (%p114_p8) target bundleno = 43 (0x2b), region = 24  ;;  %s158_s18 = sld [smem:[#allocation3 + %s425_s17]] (!%p114_p8) }
  0x17   : > { %s163_s19 = sadd.s32 (!%p114_p8), 1, %s425_s17  ;;  %s169_s21 = sadd.s32 (!%p114_p8), 2, %s425_s17 }
  0x18   : > { %s164_s20 = sld [smem:[#allocation3 + %s163_s19]] (!%p114_p8)  ;;  %s175_s3 = sadd.s32 (!%p114_p8), 3, %s425_s17 }
  0x19   : > { %s170_s27 = sld [smem:[#allocation3 + %s169_s21]] (!%p114_p8)  ;;  %s181_s6 = sadd.s32 (!%p114_p8), 4, %s425_s17 }
  0x1a   : > { %s176_s5 = sld [smem:[#allocation3 + %s175_s3]] (!%p114_p8)  ;;  %s187_s7 = sadd.s32 (!%p114_p8), 5, %s425_s17 }
  0x1b   : > { %s480_s14 = smov (!%p139_p9, %s378_s14), 1  ;;  %s182_s9 = sld [smem:[#allocation3 + %s181_s6]] }
  0x1c   : > { %s324_s22 = smul.u32 24, %s480_s14  ;;  %s323_s23 = sshll.u32 %s480_s14, 4 }
  0x1d   : > { %s433_s26 = scalar_lea.vmem %s474_s2, %s323_s23  ;;  %s188_s10 = sld [smem:[#allocation3 + %s187_s7]] }
  0x1e   : > { %s438_s30 = scalar_lea.vmem %s473_s1, %s324_s22  ;;  %s193_s11 = sadd.s32 6, %s425_s17 }
  0x1f   : > { %v155_v0 = vld [vmem:[%s438_s30] sm:$0x1]  ;;  %s252_s4 = scalar_lea.vmem %s438_s30, %s158_s18  ;;  %s254_s8 = scalar_lea.vmem %s438_s30, %s164_s20 }
  0x20   : > { %156 = vst [vmem:[%s433_s26] sm:$0x1] %v155_v0  ;;  %v313_v1 = vld [vmem:[%s252_s4 + $0x1] sm:$0x1]  ;;  %s256_s12 = scalar_lea.vmem %s438_s30, %s170_s27  ;;  %s194_s13 = sld [smem:[#allocation3 + %s193_s11]] }
  0x21   : > { %162 = vst [vmem:[%s433_s26 + $0x1] sm:$0x1] %v313_v1  ;;  %v314_v2 = vld [vmem:[%s254_s8 + $0x1] sm:$0x1]  ;;  %s199_s14 = sadd.s32 7, %s425_s17  ;;  %s258_s18 = scalar_lea.vmem %s438_s30, %s176_s5 }
  0x22   : > { %168 = vst [vmem:[%s433_s26 + $0x2] sm:$0x1] %v314_v2  ;;  %v315_v3 = vld [vmem:[%s256_s12 + $0x1] sm:$0x1]  ;;  %s200_s19 = sld [smem:[#allocation3 + %s199_s14]]  ;;  %s260_s20 = scalar_lea.vmem %s438_s30, %s182_s9 }
  0x23   : > { %174 = vst [vmem:[%s433_s26 + $0x3] sm:$0x1] %v315_v3  ;;  %v316_v4 = vld [vmem:[%s258_s18 + $0x1] sm:$0x1]  ;;  %s262_s21 = scalar_lea.vmem %s438_s30, %s188_s10 }
  0x24   : > { %180 = vst [vmem:[%s433_s26 + $0x4] sm:$0x1] %v316_v4  ;;  %v317_v5 = vld [vmem:[%s260_s20 + $0x1] sm:$0x1] }
  0x25   : > { %186 = vst [vmem:[%s433_s26 + $0x5] sm:$0x1] %v317_v5  ;;  %v318_v6 = vld [vmem:[%s262_s21 + $0x1] sm:$0x1] }
  0x26   : > { %s264_s22 = scalar_lea.vmem %s438_s30, %s194_s13  ;;  %192 = vst [vmem:[%s433_s26 + $0x6] sm:$0x1] %v318_v6 }
  0x27   : > { %v319_v7 = vld [vmem:[%s264_s22 + $0x1] sm:$0x1] }
  0x28   : > { %198 = vst [vmem:[%s433_s26 + $0x7] sm:$0x1] %v319_v7  ;;  %s266_s23 = scalar_lea.vmem %s438_s30, %s200_s19 }
  0x29   : > { %v320_v8 = vld [vmem:[%s266_s23 + $0x1] sm:$0x1] }
  0x2a   : > { %204 = vst [vmem:[%s433_s26 + $0x8] sm:$0x1] %v320_v8 }
  0x2b PF: > { %s18_s16 = sadd.s32 1, %s386_s16   ;;  %s475_s14 = smov %s382_s15 }
  0x2c   : > { %p15_p10 = scmp.ge.s32.totalorder %s18_s16, 4   ;;  %s476_s15 = smov %s478_s0 }
  0x2e   :  { %17 = sbr.rel (!%p15_p10) target bundleno = 17 (0x11), region = 62 }

</bundles_post_ra>
